<compile_context>
chip_gen: v6e
topology: v6e:2x2x1
jax: 0.10.0
libtpu: 0.0.40
codegen_flags: <defaults>
</compile_context>

<pallas_src>
import functools

import jax
import jax.numpy as jnp
from jax.experimental import pallas as pl
from jax.experimental.pallas import tpu as pltpu


def _round_up(v, m):
    return (v + m - 1) // m * m


def _cdiv(a, b):
    return -(-a // b)


def _apply_activation(y, activation):
    if activation == "tanh":
        return jnp.tanh(y)
    elif activation == "relu":
        return jnp.maximum(y, 0.0)
    elif activation == "sigmoid":
        return jax.nn.sigmoid(y)
    elif activation == "gelu":
        # Matches torch.nn.GELU() default (exact erf form).
        return jax.nn.gelu(y, approximate=False)
    elif activation == "gelu_tanh":
        # EUP-friendly tanh approximation (prefer on v5e, where exact erf is a
        # long f32 VPU polynomial); differs from nn.GELU() by ~1e-3 abs.
        return jax.nn.gelu(y, approximate=True)
    else:
        raise ValueError(f"unknown activation {activation!r}")


def _mlp_fused_kernel(x_ref, *refs, activation, num_layers, compute_dtype):
    """refs = (w0, b0, w1, b1, ..., o_ref).  One batch tile, all layers."""
    o_ref = refs[-1]
    h = x_ref[...].astype(compute_dtype)
    for layer in range(num_layers):
        w = refs[2 * layer][...]                          # (K_pad, N_pad) bf16
        b = refs[2 * layer + 1][...].astype(jnp.float32)  # (1, N_pad)  f32
        y = jnp.dot(h, w, preferred_element_type=jnp.float32)   # MXU, f32 acc
        y = _apply_activation(y + b, activation)                 # f32 epilogue
        if layer + 1 < num_layers:
            h = y.astype(compute_dtype)         # stays in VMEM/vregs, no HBM
        else:
            o_ref[...] = y.astype(o_ref.dtype)  # lane-dense store


def pad_mlp_params(params, compute_dtype=jnp.bfloat16):
    """Zero-pad feature dims to multiples of 128 (lane axis) and cast weights.

    Do this ONCE (module init), not per forward call.  The zero fill of padded
    weight *rows* is load-bearing: it cancels the activation(0) values living
    in padded lanes of the previous layer (e.g. sigmoid(0)=0.5).
    Returns (padded_params, in_dim, out_dim).
    """
    in_dim = params[0][0].shape[0]
    last = _round_up(in_dim, 128)
    padded = []
    for w, b in params:
        k, n = w.shape
        n_pad = _round_up(n, 128)
        w_p = jnp.zeros((last, n_pad), compute_dtype).at[:k, :n].set(
            w.astype(compute_dtype))
        b_p = jnp.zeros((1, n_pad), jnp.float32).at[:, :n].set(
            jnp.reshape(b, (1, n)).astype(jnp.float32))
        padded.append((w_p, b_p))
        last = n_pad
    out_dim = params[-1][0].shape[1]
    return padded, in_dim, out_dim


def _choose_batch_tile(batch, block_batch, *, sublane=16, min_steps=2):
    """Pick (batch_tile, padded_batch).

    * tile is a multiple of 16 rows (bf16 sublane packing).
    * the grid has >= min_steps steps whenever the batch is big enough, so the
      single "parallel" axis shards across both TensorCores on v7x.
    * tile shrinks toward ceil(batch / n_tiles) so batch padding stays small
      (e.g. batch=300 pads to 320, not 512).
    """
    if batch < 2 * sublane:
        min_steps = 1
    n_tiles = max(min_steps, _cdiv(batch, block_batch))
    tb = _round_up(_cdiv(batch, n_tiles), sublane)
    b_pad = _round_up(batch, tb)
    return tb, b_pad


def mlp_forward_padded(x, padded_params, out_dim, *, activation="tanh",
                       compute_dtype=jnp.bfloat16, block_batch=512):
    """Fused MLP forward on pre-padded params (see pad_mlp_params).

    x: (batch, in_dim) with in_dim <= padded_params[0][0].shape[0].
    Output dtype follows x.dtype (pass bf16 x to halve HBM streaming bytes).
    """
    batch, in_dim = x.shape
    d_in = padded_params[0][0].shape[0]
    n_out_pad = padded_params[-1][0].shape[1]
    num_layers = len(padded_params)
    assert in_dim <= d_in, (in_dim, d_in)

    tb, b_pad = _choose_batch_tile(batch, block_batch)

    if b_pad == batch and in_dim == d_in:
        x_p = x                      # already aligned: no extra HBM copy
    else:
        x_p = jnp.zeros((b_pad, d_in), x.dtype).at[:batch, :in_dim].set(x)

    kernel = functools.partial(
        _mlp_fused_kernel, activation=activation,
        num_layers=num_layers, compute_dtype=compute_dtype)

    itemsize = jnp.dtype(x.dtype).itemsize
    weight_bytes = sum(w.size * w.dtype.itemsize + b.size * b.dtype.itemsize
                       for w, b in padded_params)
    max_n_pad = max(w.shape[1] for w, _ in padded_params)

    flops = 2 * b_pad * sum(w.shape[0] * w.shape[1] for w, _ in padded_params)
    transcendentals = (0 if activation == "relu"
                       else b_pad * sum(w.shape[1] for w, _ in padded_params))
    bytes_accessed = (x_p.size * itemsize + weight_bytes
                      + b_pad * n_out_pad * itemsize)

    def _run(single_buffer_weights):
        def const_spec(shape):
            # Constant index_map => copied into VMEM once.  With Buffered(1)
            # it is also allocated once (default double-buffering would cost
            # 2x the resident weight footprint -- worst on v7x's 64 MiB/TC).
            if single_buffer_weights:
                return pl.BlockSpec(shape, lambda i: (0, 0),
                                    pipeline_mode=pl.Buffered(1))
            return pl.BlockSpec(shape, lambda i: (0, 0))

        in_specs = [pl.BlockSpec((tb, d_in), lambda i: (i, 0))]
        flat_args = []
        for w_p, b_p in padded_params:
            in_specs.append(const_spec(w_p.shape))
            in_specs.append(const_spec(b_p.shape))
            flat_args += [w_p, b_p]

        wfac = 1 if single_buffer_weights else 2
        working_set = (2 * tb * d_in * itemsize          # x double buffer
                       + 2 * tb * n_out_pad * itemsize   # out double buffer
                       + wfac * weight_bytes             # resident weights
                       + 4 * tb * max_n_pad * 4)         # f32 intermediates
        vmem_limit = int(min(max(2 * working_set, 32 * 1024 * 1024),
                             128 * 1024 * 1024))

        return pl.pallas_call(
            kernel,
            out_shape=jax.ShapeDtypeStruct((b_pad, n_out_pad), x.dtype),
            grid_spec=pltpu.PrefetchScalarGridSpec(
                num_scalar_prefetch=0,
                grid=(b_pad // tb,),
                in_specs=in_specs,
                out_specs=pl.BlockSpec((tb, n_out_pad), lambda i: (i, 0)),
            ),
            compiler_params=pltpu.CompilerParams(
                dimension_semantics=("parallel",),
                vmem_limit_bytes=vmem_limit,
            ),
            cost_estimate=pl.CostEstimate(
                flops=flops, transcendentals=transcendentals,
                bytes_accessed=bytes_accessed),
        )(x_p, *flat_args)

    try:
        out = _run(single_buffer_weights=True)
    except Exception:
        # Older Pallas without BlockSpec(pipeline_mode=...) / Buffered(1):
        # fall back to default (double-buffered) weight specs.
        out = _run(single_buffer_weights=False)

    return out[:batch, :out_dim]


def mlp_forward(x, params, *, activation="tanh",
                compute_dtype=jnp.bfloat16, block_batch=512):
    """Convenience wrapper for raw [(W (K,N), b (1,N)), ...] params.

    Pads/casts the params on every call -- prefer MLPPallas / pad_mlp_params
    for repeated forwards (padding is then a one-time cost).
    """
    padded, _, out_dim = pad_mlp_params(params, compute_dtype)
    return mlp_forward_padded(x, padded, out_dim, activation=activation,
                              compute_dtype=compute_dtype,
                              block_batch=block_batch)


class MLPPallas:
    """Pallas equivalent of the PyTorch MLP module (fused forward)."""

    def __init__(self, input_dim, hidden_dims=(128, 128), activation="tanh",
                 key=None, dtype=jnp.float32, compute_dtype=jnp.bfloat16,
                 block_batch=512):
        self.activation = activation
        self.out_dim = hidden_dims[-1]
        self.compute_dtype = compute_dtype
        self.block_batch = block_batch
        if key is None:
            key = jax.random.PRNGKey(0)
        self.params = []
        last_dim = input_dim
        for nh in hidden_dims:
            key, wk, bk = jax.random.split(key, 3)
            # nn.Linear default init: U(-1/sqrt(fan_in), 1/sqrt(fan_in))
            bound = 1.0 / (last_dim ** 0.5)
            w = jax.random.uniform(wk, (last_dim, nh), dtype,
                                   minval=-bound, maxval=bound)
            b = jax.random.uniform(bk, (1, nh), dtype,
                                   minval=-bound, maxval=bound)
            self.params.append((w, b))
            last_dim = nh
        # Padding + bf16 cast hoisted out of the forward path (perf review):
        # done once here instead of as per-call XLA copies.
        self.padded_params, self.in_dim, _ = pad_mlp_params(
            self.params, compute_dtype)

    def __call__(self, x):
        return mlp_forward_padded(
            x, self.padded_params, self.out_dim, activation=self.activation,
            compute_dtype=self.compute_dtype, block_batch=self.block_batch)


if __name__ == "__main__":
    key = jax.random.PRNGKey(0)
    key, xk = jax.random.split(key)

    batch, input_dim = 50, 16          # odd batch: exercises the tail-padding path
    hidden_dims = (128, 128)

    x = jax.random.normal(xk, (batch, input_dim), jnp.float32)

    # small block_batch so the demo runs a >1-step ("parallel") grid
    mlp = MLPPallas(input_dim, hidden_dims, activation="tanh", key=key,
                    block_batch=32)
    out = jax.block_until_ready(mlp(x))

    # Reference in plain JAX, mirroring the kernel's bf16-matmul / f32-epilogue.
    # (A pure-f32 torch MLP differs from this by ~1e-2 rel due to bf16 weights.)
    ref = x
    for w, b in mlp.params:
        y = jnp.dot(ref.astype(jnp.bfloat16), w.astype(jnp.bfloat16),
                    preferred_element_type=jnp.float32) + b.astype(jnp.float32)
        ref = jnp.tanh(y)

    assert out.shape == (batch, hidden_dims[-1]), out.shape
    assert jnp.allclose(out, ref, atol=1e-3, rtol=1e-3), (
        float(jnp.max(jnp.abs(out - ref))))

    print("KERNEL_OK")
</pallas_src>

<mosaic_0001>
module attributes {stable_mosaic.version = 11 : i64} {
  func.func @_mlp_fused_kernel(%arg0: i32, %arg1: memref<32x128xf32, #tpu.memory_space<vmem>>, %arg2: memref<128x128xbf16, #tpu.memory_space<vmem>>, %arg3: memref<1x128xf32, #tpu.memory_space<vmem>>, %arg4: memref<128x128xbf16, #tpu.memory_space<vmem>>, %arg5: memref<1x128xf32, #tpu.memory_space<vmem>>, %arg6: memref<32x128xf32, #tpu.memory_space<vmem>>) attributes {dimension_semantics = [#tpu.dimension_semantics<parallel>], iteration_bounds = array<i64: 2>, scalar_prefetch = 0 : i64, scratch_operands = 0 : i64, tpu.core_type = #tpu.core_type<tc>, window_params = [{transform_indices = @transform_0, window_bounds = array<i64: 32, 128>}, {pipeline_mode = #tpu.pipeline_mode<synchronous>, transform_indices = @transform_1, window_bounds = array<i64: 128, 128>}, {pipeline_mode = #tpu.pipeline_mode<synchronous>, transform_indices = @transform_2, window_bounds = array<i64: 1, 128>}, {pipeline_mode = #tpu.pipeline_mode<synchronous>, transform_indices = @transform_3, window_bounds = array<i64: 128, 128>}, {pipeline_mode = #tpu.pipeline_mode<synchronous>, transform_indices = @transform_4, window_bounds = array<i64: 1, 128>}, {transform_indices = @transform_5, window_bounds = array<i64: 32, 128>}]} {
    %c0 = arith.constant 0 : index
    %c0_0 = arith.constant 0 : index
    %0 = vector.load %arg1[%c0, %c0_0] : memref<32x128xf32, #tpu.memory_space<vmem>>, vector<32x128xf32>
    %1 = arith.truncf %0 : vector<32x128xf32> to vector<32x128xbf16>
    %c0_1 = arith.constant 0 : index
    %c0_2 = arith.constant 0 : index
    %2 = vector.load %arg2[%c0_1, %c0_2] : memref<128x128xbf16, #tpu.memory_space<vmem>>, vector<128x128xbf16>
    %c0_3 = arith.constant 0 : index
    %c0_4 = arith.constant 0 : index
    %3 = vector.load %arg3[%c0_3, %c0_4] : memref<1x128xf32, #tpu.memory_space<vmem>>, vector<1x128xf32>
    %cst = arith.constant dense<0.000000e+00> : vector<32x128xf32>
    %4 = tpu.matmul %1, %2, %cst {dimension_numbers = #tpu.dot_dimension_numbers<[1], [0], [0], [1], [0, 0, 1, 1], [], []>} : vector<32x128xbf16>, vector<128x128xbf16>, vector<32x128xf32> -> vector<32x128xf32>
    %5 = vector.broadcast %3 : vector<1x128xf32> to vector<32x128xf32>
    %6 = arith.addf %4, %5 : vector<32x128xf32>
    %7 = math.tanh %6 : vector<32x128xf32>
    %8 = arith.truncf %7 : vector<32x128xf32> to vector<32x128xbf16>
    %c0_5 = arith.constant 0 : index
    %c0_6 = arith.constant 0 : index
    %9 = vector.load %arg4[%c0_5, %c0_6] : memref<128x128xbf16, #tpu.memory_space<vmem>>, vector<128x128xbf16>
    %c0_7 = arith.constant 0 : index
    %c0_8 = arith.constant 0 : index
    %10 = vector.load %arg5[%c0_7, %c0_8] : memref<1x128xf32, #tpu.memory_space<vmem>>, vector<1x128xf32>
    %cst_9 = arith.constant dense<0.000000e+00> : vector<32x128xf32>
    %11 = tpu.matmul %8, %9, %cst_9 {dimension_numbers = #tpu.dot_dimension_numbers<[1], [0], [0], [1], [0, 0, 1, 1], [], []>} : vector<32x128xbf16>, vector<128x128xbf16>, vector<32x128xf32> -> vector<32x128xf32>
    %12 = vector.broadcast %10 : vector<1x128xf32> to vector<32x128xf32>
    %13 = arith.addf %11, %12 : vector<32x128xf32>
    %14 = math.tanh %13 : vector<32x128xf32>
    %c0_10 = arith.constant 0 : index
    %c0_11 = arith.constant 0 : index
    %15 = vector.load %arg6[%c0_10, %c0_11] : memref<32x128xf32, #tpu.memory_space<vmem>>, vector<32x128xf32>
    tpu.vector_store %arg6[%c0_10, %c0_11], %14 {strides = array<i32>} : memref<32x128xf32, #tpu.memory_space<vmem>>, vector<32x128xf32>,
    return
  }
  func.func @transform_0(%arg0: i32) -> (i32, i32) {
    %c0_i32 = arith.constant 0 : i32
    %c0_i32_0 = arith.constant 0 : i32
    return %arg0, %c0_i32 : i32, i32
  }
  func.func @transform_1(%arg0: i32) -> (i32, i32) {
    %c0_i32 = arith.constant 0 : i32
    %c0_i32_0 = arith.constant 0 : i32
    %c0_i32_1 = arith.constant 0 : i32
    return %c0_i32, %c0_i32_0 : i32, i32
  }
  func.func @transform_2(%arg0: i32) -> (i32, i32) {
    %c0_i32 = arith.constant 0 : i32
    %c0_i32_0 = arith.constant 0 : i32
    %c0_i32_1 = arith.constant 0 : i32
    return %c0_i32, %c0_i32_0 : i32, i32
  }
  func.func @transform_3(%arg0: i32) -> (i32, i32) {
    %c0_i32 = arith.constant 0 : i32
    %c0_i32_0 = arith.constant 0 : i32
    %c0_i32_1 = arith.constant 0 : i32
    return %c0_i32, %c0_i32_0 : i32, i32
  }
  func.func @transform_4(%arg0: i32) -> (i32, i32) {
    %c0_i32 = arith.constant 0 : i32
    %c0_i32_0 = arith.constant 0 : i32
    %c0_i32_1 = arith.constant 0 : i32
    return %c0_i32, %c0_i32_0 : i32, i32
  }
  func.func @transform_5(%arg0: i32) -> (i32, i32) {
    %c0_i32 = arith.constant 0 : i32
    %c0_i32_0 = arith.constant 0 : i32
    return %arg0, %c0_i32 : i32, i32
  }
}

module attributes {stable_mosaic.version = 11 : i64} {
  func.func @_mlp_fused_kernel(%arg0: i32, %arg1: memref<32x128xf32, #tpu.memory_space<vmem>>, %arg2: memref<128x128xbf16, #tpu.memory_space<vmem>>, %arg3: memref<1x128xf32, #tpu.memory_space<vmem>>, %arg4: memref<128x128xbf16, #tpu.memory_space<vmem>>, %arg5: memref<1x128xf32, #tpu.memory_space<vmem>>, %arg6: memref<32x128xf32, #tpu.memory_space<vmem>>) attributes {dimension_semantics = [#tpu.dimension_semantics<parallel>], iteration_bounds = array<i64: 2>, scalar_prefetch = 0 : i64, scratch_operands = 0 : i64, tpu.core_type = #tpu.core_type<tc>, window_params = [{transform_indices = @transform_0, window_bounds = array<i64: 32, 128>}, {pipeline_mode = #tpu.pipeline_mode<synchronous>, transform_indices = @transform_1, window_bounds = array<i64: 128, 128>}, {pipeline_mode = #tpu.pipeline_mode<synchronous>, transform_indices = @transform_2, window_bounds = array<i64: 1, 128>}, {pipeline_mode = #tpu.pipeline_mode<synchronous>, transform_indices = @transform_3, window_bounds = array<i64: 128, 128>}, {pipeline_mode = #tpu.pipeline_mode<synchronous>, transform_indices = @transform_4, window_bounds = array<i64: 1, 128>}, {transform_indices = @transform_5, window_bounds = array<i64: 32, 128>}]} {
    %c0 = arith.constant 0 : index
    %c0_0 = arith.constant 0 : index
    %0 = vector.load %arg1[%c0, %c0_0] : memref<32x128xf32, #tpu.memory_space<vmem>>, vector<32x128xf32>
    %1 = arith.truncf %0 : vector<32x128xf32> to vector<32x128xbf16>
    %c0_1 = arith.constant 0 : index
    %c0_2 = arith.constant 0 : index
    %2 = vector.load %arg2[%c0_1, %c0_2] : memref<128x128xbf16, #tpu.memory_space<vmem>>, vector<128x128xbf16>
    %c0_3 = arith.constant 0 : index
    %c0_4 = arith.constant 0 : index
    %3 = vector.load %arg3[%c0_3, %c0_4] : memref<1x128xf32, #tpu.memory_space<vmem>>, vector<1x128xf32>
    %cst = arith.constant dense<0.000000e+00> : vector<32x128xf32>
    %4 = tpu.matmul %1, %2, %cst {dimension_numbers = #tpu.dot_dimension_numbers<[1], [0], [0], [1], [0, 0, 1, 1], [], []>} : vector<32x128xbf16>, vector<128x128xbf16>, vector<32x128xf32> -> vector<32x128xf32>
    %5 = vector.broadcast %3 : vector<1x128xf32> to vector<32x128xf32>
    %6 = arith.addf %4, %5 : vector<32x128xf32>
    %7 = math.tanh %6 : vector<32x128xf32>
    %8 = arith.truncf %7 : vector<32x128xf32> to vector<32x128xbf16>
    %c0_5 = arith.constant 0 : index
    %c0_6 = arith.constant 0 : index
    %9 = vector.load %arg4[%c0_5, %c0_6] : memref<128x128xbf16, #tpu.memory_space<vmem>>, vector<128x128xbf16>
    %c0_7 = arith.constant 0 : index
    %c0_8 = arith.constant 0 : index
    %10 = vector.load %arg5[%c0_7, %c0_8] : memref<1x128xf32, #tpu.memory_space<vmem>>, vector<1x128xf32>
    %cst_9 = arith.constant dense<0.000000e+00> : vector<32x128xf32>
    %11 = tpu.matmul %8, %9, %cst_9 {dimension_numbers = #tpu.dot_dimension_numbers<[1], [0], [0], [1], [0, 0, 1, 1], [], []>} : vector<32x128xbf16>, vector<128x128xbf16>, vector<32x128xf32> -> vector<32x128xf32>
    %12 = vector.broadcast %10 : vector<1x128xf32> to vector<32x128xf32>
    %13 = arith.addf %11, %12 : vector<32x128xf32>
    %14 = math.tanh %13 : vector<32x128xf32>
    %c0_10 = arith.constant 0 : index
    %c0_11 = arith.constant 0 : index
    %15 = vector.load %arg6[%c0_10, %c0_11] : memref<32x128xf32, #tpu.memory_space<vmem>>, vector<32x128xf32>
    tpu.vector_store %arg6[%c0_10, %c0_11], %14 {strides = array<i32>} : memref<32x128xf32, #tpu.memory_space<vmem>>, vector<32x128xf32>,
    return
  }
  func.func @transform_0(%arg0: i32) -> (i32, i32) {
    %c0_i32 = arith.constant 0 : i32
    %c0_i32_0 = arith.constant 0 : i32
    return %arg0, %c0_i32 : i32, i32
  }
  func.func @transform_1(%arg0: i32) -> (i32, i32) {
    %c0_i32 = arith.constant 0 : i32
    %c0_i32_0 = arith.constant 0 : i32
    %c0_i32_1 = arith.constant 0 : i32
    return %c0_i32, %c0_i32_0 : i32, i32
  }
  func.func @transform_2(%arg0: i32) -> (i32, i32) {
    %c0_i32 = arith.constant 0 : i32
    %c0_i32_0 = arith.constant 0 : i32
    %c0_i32_1 = arith.constant 0 : i32
    return %c0_i32, %c0_i32_0 : i32, i32
  }
  func.func @transform_3(%arg0: i32) -> (i32, i32) {
    %c0_i32 = arith.constant 0 : i32
    %c0_i32_0 = arith.constant 0 : i32
    %c0_i32_1 = arith.constant 0 : i32
    return %c0_i32, %c0_i32_0 : i32, i32
  }
  func.func @transform_4(%arg0: i32) -> (i32, i32) {
    %c0_i32 = arith.constant 0 : i32
    %c0_i32_0 = arith.constant 0 : i32
    %c0_i32_1 = arith.constant 0 : i32
    return %c0_i32, %c0_i32_0 : i32, i32
  }
  func.func @transform_5(%arg0: i32) -> (i32, i32) {
    %c0_i32 = arith.constant 0 : i32
    %c0_i32_0 = arith.constant 0 : i32
    return %arg0, %c0_i32 : i32, i32
  }
}

</mosaic_0001>

<bundles_post_ra>
// kernel: tpu_custom_call.1
= control target key start
LH: loop header
LB: loop body
LE: loop exit
PB: predicated region body
PF: predicated region fallthrough
CT: control target
= control target key end

     0   :  { %10 = vsyncpa [#allocation3], 0  ;;  %s1238_s0 = inlined_call_operand.hbm [shape: f32[64,128], index: 0, kind: input, shape index: {}]   ;;  %s1239_s1 = inlined_call_operand.hbm [shape: bf16[128,128], index: 1, kind: input, shape index: {}]   ;;  %s1240_s2 = inlined_call_operand.vmem [shape: f32[1,128], index: 2, kind: input, shape index: {}]   ;;  %s1241_s3 = inlined_call_operand.hbm [shape: bf16[128,128], index: 3, kind: input, shape index: {}]   ;;  %s1242_s4 = inlined_call_operand.vmem [shape: f32[1,128], index: 4, kind: input, shape index: {}]   ;;  %s1243_s5 = inlined_call_operand.hbm [shape: f32[64,128], index: 5, kind: output, shape index: {}]  }
   0x1   :  { %12 = vsyncpa [#allocation3 + $0x1], 0 }
   0x2   :  { %13 = vsyncpa [#allocation6], 0 }
   0x3   :  { %14 = vsyncpa [#allocation4], 0 }
   0x4   :  { %16 = vsyncpa [#allocation4 + $0x1], 0  ;;  %s1034_s18 = smov 0   ;;  %s1036_s19 = smov 0  }
   0x5   :  { %s1038_s20 = smov 0   ;;  %s1040_s21 = smov 0  }
   0x6 LB: > { %s1055_s22 = sadd.s32 4294967295, %s992_s21   ;;  %s641_s23 = sadd.s32 4294967294, %s992_s21   ;;  %s992_s21 = sphi %s1040_s21, %s1265_s21   ;;  %s988_s20 = sphi %s1038_s20, %s1264_s20   ;;  %s984_s19 = sphi %s1036_s19, %s1263_s19   ;;  %s980_s18 = sphi %s1034_s18, %s1262_s18  }
   0x7   : > { %p42_p0 = scmp.ne.s32.totalorder %s984_s19, %s980_s18  ;;  %p1244_p1 = scmp.eq.s32.totalorder %s1055_s22, 0 }
   0x8   : > { %p156_p3 = scmp.eq.s32.totalorder %s641_s23, 1  ;;  %p642_p5 = scmp.ge.s32.totalorder %s992_s21, 1 }
   0x9   : > { %p1064_p4 = por %p1244_p1, %p42_p0  ;;  %p163_p7 = scmp.lt.s32.totalorder %s992_s21, 3 }
   0xa   : > { %p1069_p6 = por %p156_p3, %p42_p0  ;;  %s994_s27 = smov [#allocation5]  }
   0xb   : > { %s1248_s24 = scalar_select %p1064_p4, 1, 0 }
   0xc   : > { %s1249_s25 = scalar_select %p1069_p6, 1, 0 }
   0xd   : > { %p1074_p8 = pnand %p642_p5, %p163_p7  ;;  %s175_s28 = sshll.u32 %s994_s27, 4  ;;  %s176_s28 = int_to_ptr.vmem [resolvable:$true] %s175_s28 }
   0xe   : > { %s995_s30 = smov [#allocation7]   ;;  %s855_s7 = scalar_lea.vmem %s176_s28, 1024 }
   0xf   : > { %s1250_s26 = scalar_select %p1074_p8, 1, 0 }
  0x10   : > { %p751_p9 = pneg %p1074_p8  ;;  %s191_s6 = sshll.u32 %s995_s30, 4  ;;  %s192_s6 = int_to_ptr.vmem [resolvable:$true] %s191_s6 }
  0x11   : > { %p856_p13 = scmp.ne.s32.totalorder %s176_s28, %s855_s7  ;;  %p863_p5 = scmp.lt.s32.totalorder %s176_s28, %s176_s28 }
  0x12   : > { %p1083_p11 = pnand %p751_p9, %p1244_p1  ;;  %p864_p7 = scmp.lt.s32.totalorder %s855_s7, %s855_s7 }
  0x14   : > { %p846_p12 = pneg %p1083_p11  ;;  %p865_p10 = por %p864_p7, %p863_p5 }
  0x16   : > { %p858_p0 = pnand %p856_p13, %p846_p12 }
  0x18   : > { %p859_p3 = pneg %p858_p0 }
  0x1a   : > { %p866_p9 = pnand %p865_p10, %p859_p3 }
  0x1c   : > { %869 = shalt.err (!%p866_p9)
}
  0x1d   : > { %s996_s8 = smov 64   ;;  %s997_s9 = smov 4  }
  0x1e   : > { %754 = dma.hbm_to_vmem [thread:$0]  (!%p1083_p11), %s1239_s1, 1024, %s176_s28, [#allocation6], %s996_s8, %s996_s8, %s997_s9  }
  0x1f   : > { %s881_s12 = scalar_lea.vmem %s192_s6, 1024  ;;  %p889_p2 = scmp.lt.s32.totalorder %s192_s6, %s192_s6 }
  0x20   : > { %p882_p1 = scmp.ne.s32.totalorder %s192_s6, %s881_s12  ;;  %p890_p6 = scmp.lt.s32.totalorder %s881_s12, %s881_s12 }
  0x22   : > { %p884_p13 = pnand %p882_p1, %p846_p12  ;;  %p891_p5 = por %p890_p6, %p889_p2 }
  0x24   : > { %p885_p0 = pneg %p884_p13 }
  0x26   : > { %p892_p10 = pnand %p891_p5, %p885_p0 }
  0x28   : > { %895 = shalt.err (!%p892_p10)
}
  0x29   : > { %757 = dma.hbm_to_vmem [thread:$0]  (!%p1083_p11), %s1241_s3, 1024, %s192_s6, [#allocation6], %s996_s8, %s996_s8, %s997_s9  }
  0x2a   : > { %s1106_s15 = sadd.s32 1, %s992_s21   ;;  %s29_s16 = sadd.s32 1, %s988_s20 }
  0x2b   : > { %s26_s17 = ssub.s32 %s992_s21, %s1106_s15  ;;  %p36_p1 = scmp.ne.s32.totalorder %s988_s20, %s984_s19 }
  0x2c   : > { %p27_p2 = scmp.eq.s32.totalorder %s26_s17, 0  ;;  %p37_p6 = scmp.eq.s32.totalorder %s992_s21, 0 }
  0x2d   : > { %p1252_p12 = scmp.eq.s32.totalorder %s1055_s22, 1  ;;  %p768_p7 = scmp.lt.s32.totalorder %s992_s21, 2 }
  0x2e   : > { %s1122_s27 = scalar_select %p27_p2, %s988_s20, %s29_s16  }
  0x2f   : > { %p1116_p3 = por %p1252_p12, %p36_p1  ;;  %p38_p9 = por %p37_p6, %p36_p1 }
  0x30   : > { %s208_s28 = sand.u32 1, %s988_s20   ;;  %s677_s30 = sshll.u32 %s992_s21, 9 }
  0x31   : > { %s1253_s23 = scalar_select %p1116_p3, 1, 0 }
  0x32   : > { %s646_s29 = sshll.u32 %s208_s28, 5  ;;  %s1129_s8 = scalar_lea.hbm %s1238_s0, %s677_s30 }
  0x33   : > { %s212_s9 = scalar_lea.vmem [#allocation2], %s646_s29  ;;  %p1133_p11 = pnand %p768_p7, %p38_p9 }
  0x34   : > { %s219_s10 = sshll.u32 %s212_s9, 4  ;;  %s1137_s12 = scalar_lea.sflag [#allocation3], %s208_s28  ;;  %s1131_s10 = int_to_ptr.vmem [resolvable:$true] %s219_s10 }
  0x35   : > { %s896_s13 = scalar_lea.hbm %s1129_s8, 512  ;;  %p898_p0 = pneg %p1133_p11 }
  0x36   : > { %p897_p13 = scmp.ne.s32.totalorder %s1129_s8, %s896_s13  ;;  %s901_s17 = scalar_lea.hbm %s1238_s0, 1024 }
  0x37   : > { %p902_p1 = scmp.lt.s32.totalorder %s1129_s8, %s1238_s0  ;;  %p903_p2 = scmp.lt.s32.totalorder %s901_s17, %s896_s13 }
  0x38   : > { %p899_p5 = pnand %p898_p0, %p897_p13 }
  0x39   : > { %p904_p6 = por %p903_p2, %p902_p1 }
  0x3a   : > { %p900_p10 = pneg %p899_p5 }
  0x3c   : > { %p905_p12 = pnand %p904_p6, %p900_p10 }
  0x3e   : > { %908 = shalt.err (!%p905_p12)
}
  0x3f   : > { %s909_s28 = scalar_lea.vmem %s1131_s10, 512  ;;  %s998_s6 = smov [#allocation2]  }
  0x40   : > { %p910_p7 = scmp.ne.s32.totalorder %s1131_s10, %s909_s28  ;;  %s914_s7 = sshll.u32 %s998_s6, 4  ;;  %s915_s7 = int_to_ptr.vmem [resolvable:$false] %s914_s7 }
  0x41   : > { %s916_s9 = scalar_lea.vmem %s915_s7, 1024  ;;  %p917_p5 = scmp.lt.s32.totalorder %s1131_s10, %s915_s7 }
  0x42   : > { %p912_p9 = pnand %p910_p7, %p898_p0  ;;  %p918_p3 = scmp.lt.s32.totalorder %s916_s9, %s909_s28 }
  0x44   : > { %p913_p13 = pneg %p912_p9  ;;  %p919_p4 = por %p918_p3, %p917_p5 }
  0x46   : > { %p920_p8 = pnand %p919_p4, %p913_p13 }
  0x48   : > { %923 = shalt.err (!%p920_p8)
}
  0x49   : > { %s999_s13 = smov 128   ;;  %s1000_s14 = smov 8  }
  0x4a   : > { %761 = dma.hbm_to_vmem [thread:$0]  (!%p1133_p11), %s1129_s8, 512, %s1131_s10, %s1137_s12, %s999_s13, %s999_s13, %s1000_s14  }
  0x4b   : > { %p1255_p0 = scmp.ne.s32.totalorder %s1250_s26, 0 }
  0x4c   : > { %s1161_s16 = sand.u32 (!%p1255_p0), 1, %s984_s19   ;;  %p1256_p4 = scmp.ne.s32.totalorder (!%p1255_p0), %s1248_s24, 0 }
  0x4d   : > { %231 = sbr.rel (%p1255_p0) target bundleno = 566 (0x236), region = 40  ;;  %s650_s17 = sshll.u32 (!%p1255_p0), %s1161_s16, 5 }
  0x4e   : > { %s234_s29 = scalar_lea.sflag (!%p1255_p0), [#allocation3], %s1161_s16  ;;  %s1167_s30 = scalar_lea.vmem (!%p1255_p0), [#allocation2], %s650_s17 }
  0x52   : > { %967 = dma.done.wait (%p1256_p4), %s234_s29, 512  }
  0x53   : > { %969 = vsyncadd (%p1256_p4), %s234_s29, 4294966784  ;;  %p1257_p8 = scmp.eq.s32.totalorder %s1055_s22, 0 }
  0x55   : > { %971 = dma.done.wait (%p1257_p8), [#allocation6], 2048   ;;  %p1258_p3 = pmov %p1257_p8 }
  0x56   : > { %v812_v0 = vld [vmem:[#allocation5 + $0x38] sm:$0xff]   ;;  %v813_v1 = vld [vmem:[#allocation5 + $0x30] sm:$0xff]   ;;  %v814_v2 = vld [vmem:[#allocation5 + $0x28] sm:$0xff]   ;;  %s271_s11 = scalar_lea.vmem [#allocation8], %s650_s17  ;;  %s678_s12 = sshll.u32 %s1055_s22, 9 }
  0x57   : > { %973 = vsyncadd (%p1258_p3), [#allocation6], 4294965248  ;;  %699 = vmatprep.subr.bf16.mxu0 %v812_v0  ;;  %v815_v3 = vld [vmem:[#allocation5 + $0x20] sm:$0xff]   ;;  %v276_v5 = vld [vmem:[%s1167_s30 + $0x8] sm:$0xff]  ;;  %s549_s28 = sshll.u32 %s271_s11, 4  ;;  %s1193_s9 = scalar_lea.hbm %s1243_s5, %s678_s12  ;;  %s1195_s28 = int_to_ptr.vmem [resolvable:$true] %s549_s28 }
  0x58   : > { %700 = vmatpush3.bf16.msra.mxu0 %v812_v0  ;;  %v275_v4 = vld [vmem:[%s1167_s30] sm:$0xff]  ;;  %v816_v7 = vld [vmem:[#allocation5 + $0x18] sm:$0xff]   ;;  %v821_v9 = vld [vmem:[#allocation7 + $0x30] sm:$0xff]   ;;  %s536_s13 = scalar_lea.sflag [#allocation4], %s1161_s16  ;;  %s924_s14 = scalar_lea.vmem %s1195_s28, 512 }
  0x59   : > { %701 = vmatprep.subr.bf16.mxu0 %v813_v1  ;;  %v279_v6 = vpack.c.bf16 %v276_v5, %v275_v4  ;;  %v820_v8 = vld [vmem:[#allocation7 + $0x38] sm:$0xff]   ;;  %v817_v10 = vld [vmem:[#allocation5 + $0x10] sm:$0xff]   ;;  %v818_v11 = vld [vmem:[#allocation5 + $0x8] sm:$0xff]   ;;  %p925_p11 = scmp.ne.s32.totalorder %s1195_s28, %s924_s14  ;;  %p1259_p10 = scmp.ne.s32.totalorder %s1253_s23, 0 }
  0x5a   : > { %719 = vmatprep.subr.bf16.mxu1 %v820_v8  ;;  %v819_v12 = vld [vmem:[#allocation5] sm:$0xff]   ;;  %v277_v13 = vld [vmem:[%s1167_s30 + $0x10] sm:$0xff]  ;;  %v278_v14 = vld [vmem:[%s1167_s30 + $0x18] sm:$0xff]  ;;  %s1001_s22 = smov [#allocation8]  }
  0x5b   : > { %715 = vmatprep.mubr.bf16.mxu0 %v279_v6  ;;  %720 = vmatpush3.bf16.msra.mxu1 %v820_v8  ;;  %v280_v15 = vpack.c.bf16 %v278_v14, %v277_v13  ;;  %v822_v16 = vld [vmem:[#allocation7 + $0x28] sm:$0xff]   ;;  %v823_v17 = vld [vmem:[#allocation7 + $0x20] sm:$0xff]   ;;  %v824_v18 = vld [vmem:[#allocation7 + $0x18] sm:$0xff]   ;;  %p926_p1 = pnand %p925_p11, %p1259_p10  ;;  %s928_s17 = sshll.u32 %s1001_s22, 4  ;;  %s929_s17 = int_to_ptr.vmem [resolvable:$false] %s928_s17 }
  0x5c   : > { %702 = vmatpush3.bf16.msra.mxu0 %v813_v1  ;;  %721 = vmatprep.subr.bf16.mxu1 %v821_v9  ;;  %v825_v19 = vld [vmem:[#allocation7 + $0x10] sm:$0xff]   ;;  %v826_v20 = vld [vmem:[#allocation7 + $0x8] sm:$0xff]   ;;  %v827_v21 = vld [vmem:[#allocation7] sm:$0xff]   ;;  %s930_s29 = scalar_lea.vmem %s929_s17, 1024  ;;  %p931_p6 = scmp.lt.s32.totalorder %s1195_s28, %s929_s17 }
  0x5d   : > { %703 = vmatprep.subr.bf16.mxu0 %v814_v2  ;;  %v654_v23 = vld [vmem:[%s1240_s2] ss:$0 sm:$0xff]  ;;  %p927_p2 = pneg %p926_p1  ;;  %p932_p12 = scmp.lt.s32.totalorder %s930_s29, %s924_s14 }
  0x5e   : > { %v663_v37 = vld [vmem:[%s1242_s4] ss:$0 sm:$0xff] }
  0x5f   : > { %722 = vmatpush3.bf16.msra.mxu1 %v821_v9  ;;  %p933_p7 = por %p932_p12, %p931_p6 }
  0x60   : > { %704 = vmatpush3.bf16.msra.mxu0 %v814_v2  ;;  %723 = vmatprep.subr.bf16.mxu1 %v822_v16 }
  0x61   : > { %705 = vmatprep.subr.bf16.mxu0 %v815_v3  ;;  %p934_p9 = pnand %p933_p7, %p927_p2 }
  0x63   : > { %724 = vmatpush3.bf16.msra.mxu1 %v822_v16 }
  0x64   : > { %706 = vmatpush3.bf16.msra.mxu0 %v815_v3  ;;  %725 = vmatprep.subr.bf16.mxu1 %v823_v17 }
  0x65   : > { %707 = vmatprep.subr.bf16.mxu0 %v816_v7 }
  0x67   : > { %726 = vmatpush3.bf16.msra.mxu1 %v823_v17 }
  0x68   : > { %708 = vmatpush3.bf16.msra.mxu0 %v816_v7  ;;  %727 = vmatprep.subr.bf16.mxu1 %v824_v18 }
  0x69   : > { %709 = vmatprep.subr.bf16.mxu0 %v817_v10 }
  0x6b   : > { %728 = vmatpush3.bf16.msra.mxu1 %v824_v18 }
  0x6c   : > { %710 = vmatpush3.bf16.msra.mxu0 %v817_v10  ;;  %729 = vmatprep.subr.bf16.mxu1 %v825_v19 }
  0x6d   : > { %711 = vmatprep.subr.bf16.mxu0 %v818_v11 }
  0x6f   : > { %730 = vmatpush3.bf16.msra.mxu1 %v825_v19 }
  0x70   : > { %712 = vmatpush3.bf16.msra.mxu0 %v818_v11  ;;  %731 = vmatprep.subr.bf16.mxu1 %v826_v20 }
  0x71   : > { %713 = vmatprep.subr.bf16.mxu0 %v819_v12 }
  0x73   : > { %732 = vmatpush3.bf16.msra.mxu1 %v826_v20 }
  0x74   : > { %714 = vmatpush3.bf16.msra.mxu0 %v819_v12  ;;  %733 = vmatprep.subr.bf16.mxu1 %v827_v21 }
  0x77   : > { %716 = vmatmul.mubr.bf16.vlgmr.msra.gmra.mxu0 %v280_v15  ;;  %734 = vmatpush3.bf16.msra.mxu1 %v827_v21 }
 0x137   : > { %v717_v22 = vpop.f32.mrf.mxu0 }
 0x138   : > { %v395_v28 = vadd.f32 %v717_v22, %v654_v23 }
 0x139   : > { %v386_v24 = vpop.f32.mrf.mxu0 }
 0x13a   : > { %v387_v25 = vadd.f32 %v654_v23, %v386_v24 }
 0x13b   : > { %v718_v26 = vpop.f32.mrf.mxu0 }
 0x13c   : > { %v398_v27 = vadd.f32 %v718_v26, %v654_v23  ;;  %828 = vtanh.f32 %v387_v25 }
 0x13d   : > { %v389_v29 = vpop.f32.mrf.mxu0 }
 0x13e   : > { %v390_v30 = vadd.f32 %v654_v23, %v389_v29  ;;  %830 = vtanh.f32 %v398_v27 }
 0x140   : > { %832 = vtanh.f32 %v390_v30 }
 0x141   : > { %834 = vtanh.f32 %v395_v28 }
 0x149   : > { %v829_v31 = vpop.eup %828 }
 0x14b   : > { %v831_v32 = vpop.eup %830 }
 0x14d   : > { %v833_v33 = vpop.eup %832 }
 0x14e   : > { %v835_v34 = vpop.eup %834  ;;  %v405_v35 = vpack.c.bf16 %v833_v33, %v829_v31 }
 0x14f   : > { %v406_v36 = vpack.c.bf16 %v831_v32, %v835_v34 }
 0x150   : > { %735 = vmatprep.mubr.bf16.mxu1 %v405_v35 }
 0x151   : > { %736 = vmatmul.mubr.bf16.vlgmr.msra.gmra.mxu1 %v406_v36 }
 0x211   : > { %v737_v38 = vpop.f32.mrf.mxu1 }
 0x212   : > { %v521_v39 = vadd.f32 %v737_v38, %v663_v37 }
 0x213   : > { %v512_v40 = vpop.f32.mrf.mxu1 }
 0x214   : > { %836 = vtanh.f32 %v521_v39  ;;  %v513_v41 = vadd.f32 %v663_v37, %v512_v40 }
 0x215   : > { %v738_v42 = vpop.f32.mrf.mxu1 }
 0x216   : > { %838 = vtanh.f32 %v513_v41  ;;  %v524_v43 = vadd.f32 %v738_v42, %v663_v37 }
 0x217   : > { %v515_v44 = vpop.f32.mrf.mxu1 }
 0x218   : > { %840 = vtanh.f32 %v524_v43  ;;  %v516_v45 = vadd.f32 %v663_v37, %v515_v44 }
 0x21a   : > { %842 = vtanh.f32 %v516_v45 }
 0x221   : > { %v837_v46 = vpop.eup %836 }
 0x222   : > { %533 = vst [vmem:[%s271_s11 + $0x10] sm:$0xff] %v837_v46 }
 0x223   : > { %v839_v47 = vpop.eup %838 }
 0x224   : > { %531 = vst [vmem:[%s271_s11] sm:$0xff] %v839_v47 }
 0x225   : > { %v841_v48 = vpop.eup %840 }
 0x226   : > { %534 = vst [vmem:[%s271_s11 + $0x18] sm:$0xff] %v841_v48 }
 0x227   : > { %v843_v49 = vpop.eup %842 }
 0x228   : > { %532 = vst [vmem:[%s271_s11 + $0x8] sm:$0xff] %v843_v49 }
 0x229   : > { %937 = shalt.err (!%p934_p9)
}
 0x22a   : > { %s938_s30 = scalar_lea.hbm %s1193_s9, 512  ;;  %s942_s8 = scalar_lea.hbm %s1243_s5, 1024 }
 0x22b   : > { %p939_p13 = scmp.ne.s32.totalorder %s1193_s9, %s938_s30  ;;  %p943_p4 = scmp.lt.s32.totalorder %s1193_s9, %s1243_s5 }
 0x22c   : > { %p944_p8 = scmp.lt.s32.totalorder %s942_s8, %s938_s30 }
 0x22d   : > { %p940_p5 = pnand %p939_p13, %p1259_p10 }
 0x22e   : > { %p945_p3 = por %p944_p8, %p943_p4 }
 0x22f   : > { %p941_p0 = pneg %p940_p5 }
 0x231   : > { %p946_p11 = pnand %p945_p3, %p941_p0 }
 0x233   : > { %949 = shalt.err (!%p946_p11)
}
 0x234   : > { %s1002_s12 = smov 128   ;;  %s1003_s6 = smov 8  }
 0x235   : > { %749 = dma.vmem_to_hbm [thread:$0]  (%p1259_p10), %s1195_s28, 512, %s1193_s9, %s536_s13, %s1002_s12, %s1002_s12, %s1003_s6  }
 0x236 PF: > { %s564_s7 = sand.u32 1, %s980_s18   ;;  %p1260_p1 = scmp.ne.s32.totalorder %s1249_s25, 0 }
 0x237   : > { %p1261_p2 = scmp.ge.s32.totalorder %s992_s21, 2  ;;  %s565_s14 = scalar_lea.sflag [#allocation4], %s564_s7 }
 0x239   : > { %p763_p6 = pnand %p1261_p2, %p1260_p1 }
 0x23b   : > { %p764_p12 = pneg %p763_p6 }
 0x23d   : > { %975 = dma.done.wait (%p764_p12), %s565_s14, 512  }
 0x23e   : > { %977 = vsyncadd (%p764_p12), %s565_s14, 4294966784  ;;  %p19_p7 = scmp.ge.s32.totalorder %s1106_s15, 4   ;;  %s1262_s18 = smov %s984_s19 }
 0x23f   : > { %s1263_s19 = smov %s988_s20  ;;  %s1264_s20 = smov %s1122_s27 }
 0x240   : > { %s1265_s21 = smov %s1106_s15  ;;  %21 = sbr.rel (!%p19_p7) target bundleno = 6 (0x6), region = 93 }
 0x245   :  { %570 = vsyncpa [#allocation3], 1 }
 0x246   :  { %572 = vsyncpa [#allocation3 + $0x1], 1 }
 0x247   :  { %573 = vsyncpa [#allocation6], 1 }
 0x248   :  { %574 = vsyncpa [#allocation4], 1 }
 0x249   :  { %576 = vsyncpa [#allocation4 + $0x1], 1 }

// kernel: tpu_custom_call.1
= control target key start
LH: loop header
LB: loop body
LE: loop exit
PB: predicated region body
PF: predicated region fallthrough
CT: control target
= control target key end

     0   :  { %10 = vsyncpa [#allocation3], 0  ;;  %s1238_s0 = inlined_call_operand.hbm [shape: f32[64,128], index: 0, kind: input, shape index: {}]   ;;  %s1239_s1 = inlined_call_operand.hbm [shape: bf16[128,128], index: 1, kind: input, shape index: {}]   ;;  %s1240_s2 = inlined_call_operand.vmem [shape: f32[1,128], index: 2, kind: input, shape index: {}]   ;;  %s1241_s3 = inlined_call_operand.hbm [shape: bf16[128,128], index: 3, kind: input, shape index: {}]   ;;  %s1242_s4 = inlined_call_operand.vmem [shape: f32[1,128], index: 4, kind: input, shape index: {}]   ;;  %s1243_s5 = inlined_call_operand.hbm [shape: f32[64,128], index: 5, kind: output, shape index: {}]  }
   0x1   :  { %12 = vsyncpa [#allocation3 + $0x1], 0 }
   0x2   :  { %13 = vsyncpa [#allocation6], 0 }
   0x3   :  { %14 = vsyncpa [#allocation4], 0 }
   0x4   :  { %16 = vsyncpa [#allocation4 + $0x1], 0  ;;  %s1034_s18 = smov 0   ;;  %s1036_s19 = smov 0  }
   0x5   :  { %s1038_s20 = smov 0   ;;  %s1040_s21 = smov 0  }
   0x6 LB: > { %s1055_s22 = sadd.s32 4294967295, %s992_s21   ;;  %s641_s23 = sadd.s32 4294967294, %s992_s21   ;;  %s992_s21 = sphi %s1040_s21, %s1265_s21   ;;  %s988_s20 = sphi %s1038_s20, %s1264_s20   ;;  %s984_s19 = sphi %s1036_s19, %s1263_s19   ;;  %s980_s18 = sphi %s1034_s18, %s1262_s18  }
   0x7   : > { %p42_p0 = scmp.ne.s32.totalorder %s984_s19, %s980_s18  ;;  %p1244_p1 = scmp.eq.s32.totalorder %s1055_s22, 0 }
   0x8   : > { %p156_p3 = scmp.eq.s32.totalorder %s641_s23, 1  ;;  %p642_p5 = scmp.ge.s32.totalorder %s992_s21, 1 }
   0x9   : > { %p1064_p4 = por %p1244_p1, %p42_p0  ;;  %p163_p7 = scmp.lt.s32.totalorder %s992_s21, 3 }
   0xa   : > { %p1069_p6 = por %p156_p3, %p42_p0  ;;  %s994_s27 = smov [#allocation5]  }
   0xb   : > { %s1248_s24 = scalar_select %p1064_p4, 1, 0 }
   0xc   : > { %s1249_s25 = scalar_select %p1069_p6, 1, 0 }
   0xd   : > { %p1074_p8 = pnand %p642_p5, %p163_p7  ;;  %s175_s28 = sshll.u32 %s994_s27, 4  ;;  %s176_s28 = int_to_ptr.vmem [resolvable:$true] %s175_s28 }
   0xe   : > { %s995_s30 = smov [#allocation7]   ;;  %s855_s7 = scalar_lea.vmem %s176_s28, 1024 }
   0xf   : > { %s1250_s26 = scalar_select %p1074_p8, 1, 0 }
  0x10   : > { %p751_p9 = pneg %p1074_p8  ;;  %s191_s6 = sshll.u32 %s995_s30, 4  ;;  %s192_s6 = int_to_ptr.vmem [resolvable:$true] %s191_s6 }
  0x11   : > { %p856_p13 = scmp.ne.s32.totalorder %s176_s28, %s855_s7  ;;  %p863_p5 = scmp.lt.s32.totalorder %s176_s28, %s176_s28 }
  0x12   : > { %p1083_p11 = pnand %p751_p9, %p1244_p1  ;;  %p864_p7 = scmp.lt.s32.totalorder %s855_s7, %s855_s7 }
  0x14   : > { %p846_p12 = pneg %p1083_p11  ;;  %p865_p10 = por %p864_p7, %p863_p5 }
  0x16   : > { %p858_p0 = pnand %p856_p13, %p846_p12 }
  0x18   : > { %p859_p3 = pneg %p858_p0 }
  0x1a   : > { %p866_p9 = pnand %p865_p10, %p859_p3 }
  0x1c   : > { %869 = shalt.err (!%p866_p9)
}
  0x1d   : > { %s996_s8 = smov 64   ;;  %s997_s9 = smov 4  }
  0x1e   : > { %754 = dma.hbm_to_vmem [thread:$0]  (!%p1083_p11), %s1239_s1, 1024, %s176_s28, [#allocation6], %s996_s8, %s996_s8, %s997_s9  }
  0x1f   : > { %s881_s12 = scalar_lea.vmem %s192_s6, 1024  ;;  %p889_p2 = scmp.lt.s32.totalorder %s192_s6, %s192_s6 }
  0x20   : > { %p882_p1 = scmp.ne.s32.totalorder %s192_s6, %s881_s12  ;;  %p890_p6 = scmp.lt.s32.totalorder %s881_s12, %s881_s12 }
  0x22   : > { %p884_p13 = pnand %p882_p1, %p846_p12  ;;  %p891_p5 = por %p890_p6, %p889_p2 }
  0x24   : > { %p885_p0 = pneg %p884_p13 }
  0x26   : > { %p892_p10 = pnand %p891_p5, %p885_p0 }
  0x28   : > { %895 = shalt.err (!%p892_p10)
}
  0x29   : > { %757 = dma.hbm_to_vmem [thread:$0]  (!%p1083_p11), %s1241_s3, 1024, %s192_s6, [#allocation6], %s996_s8, %s996_s8, %s997_s9  }
  0x2a   : > { %s1106_s15 = sadd.s32 1, %s992_s21   ;;  %s29_s16 = sadd.s32 1, %s988_s20 }
  0x2b   : > { %s26_s17 = ssub.s32 %s992_s21, %s1106_s15  ;;  %p36_p1 = scmp.ne.s32.totalorder %s988_s20, %s984_s19 }
  0x2c   : > { %p27_p2 = scmp.eq.s32.totalorder %s26_s17, 0  ;;  %p37_p6 = scmp.eq.s32.totalorder %s992_s21, 0 }
  0x2d   : > { %p1252_p12 = scmp.eq.s32.totalorder %s1055_s22, 1  ;;  %p768_p7 = scmp.lt.s32.totalorder %s992_s21, 2 }
  0x2e   : > { %s1122_s27 = scalar_select %p27_p2, %s988_s20, %s29_s16  }
  0x2f   : > { %p1116_p3 = por %p1252_p12, %p36_p1  ;;  %p38_p9 = por %p37_p6, %p36_p1 }
  0x30   : > { %s208_s28 = sand.u32 1, %s988_s20   ;;  %s677_s30 = sshll.u32 %s992_s21, 9 }
  0x31   : > { %s1253_s23 = scalar_select %p1116_p3, 1, 0 }
  0x32   : > { %s646_s29 = sshll.u32 %s208_s28, 5  ;;  %s1129_s8 = scalar_lea.hbm %s1238_s0, %s677_s30 }
  0x33   : > { %s212_s9 = scalar_lea.vmem [#allocation2], %s646_s29  ;;  %p1133_p11 = pnand %p768_p7, %p38_p9 }
  0x34   : > { %s219_s10 = sshll.u32 %s212_s9, 4  ;;  %s1137_s12 = scalar_lea.sflag [#allocation3], %s208_s28  ;;  %s1131_s10 = int_to_ptr.vmem [resolvable:$true] %s219_s10 }
  0x35   : > { %s896_s13 = scalar_lea.hbm %s1129_s8, 512  ;;  %p898_p0 = pneg %p1133_p11 }
  0x36   : > { %p897_p13 = scmp.ne.s32.totalorder %s1129_s8, %s896_s13  ;;  %s901_s17 = scalar_lea.hbm %s1238_s0, 1024 }
  0x37   : > { %p902_p1 = scmp.lt.s32.totalorder %s1129_s8, %s1238_s0  ;;  %p903_p2 = scmp.lt.s32.totalorder %s901_s17, %s896_s13 }
  0x38   : > { %p899_p5 = pnand %p898_p0, %p897_p13 }
  0x39   : > { %p904_p6 = por %p903_p2, %p902_p1 }
  0x3a   : > { %p900_p10 = pneg %p899_p5 }
  0x3c   : > { %p905_p12 = pnand %p904_p6, %p900_p10 }
  0x3e   : > { %908 = shalt.err (!%p905_p12)
}
  0x3f   : > { %s909_s28 = scalar_lea.vmem %s1131_s10, 512  ;;  %s998_s6 = smov [#allocation2]  }
  0x40   : > { %p910_p7 = scmp.ne.s32.totalorder %s1131_s10, %s909_s28  ;;  %s914_s7 = sshll.u32 %s998_s6, 4  ;;  %s915_s7 = int_to_ptr.vmem [resolvable:$false] %s914_s7 }
  0x41   : > { %s916_s9 = scalar_lea.vmem %s915_s7, 1024  ;;  %p917_p5 = scmp.lt.s32.totalorder %s1131_s10, %s915_s7 }
  0x42   : > { %p912_p9 = pnand %p910_p7, %p898_p0  ;;  %p918_p3 = scmp.lt.s32.totalorder %s916_s9, %s909_s28 }
  0x44   : > { %p913_p13 = pneg %p912_p9  ;;  %p919_p4 = por %p918_p3, %p917_p5 }
  0x46   : > { %p920_p8 = pnand %p919_p4, %p913_p13 }
  0x48   : > { %923 = shalt.err (!%p920_p8)
}
  0x49   : > { %s999_s13 = smov 128   ;;  %s1000_s14 = smov 8  }
  0x4a   : > { %761 = dma.hbm_to_vmem [thread:$0]  (!%p1133_p11), %s1129_s8, 512, %s1131_s10, %s1137_s12, %s999_s13, %s999_s13, %s1000_s14  }
  0x4b   : > { %p1255_p0 = scmp.ne.s32.totalorder %s1250_s26, 0 }
  0x4c   : > { %s1161_s16 = sand.u32 (!%p1255_p0), 1, %s984_s19   ;;  %p1256_p4 = scmp.ne.s32.totalorder (!%p1255_p0), %s1248_s24, 0 }
  0x4d   : > { %231 = sbr.rel (%p1255_p0) target bundleno = 566 (0x236), region = 40  ;;  %s650_s17 = sshll.u32 (!%p1255_p0), %s1161_s16, 5 }
  0x4e   : > { %s234_s29 = scalar_lea.sflag (!%p1255_p0), [#allocation3], %s1161_s16  ;;  %s1167_s30 = scalar_lea.vmem (!%p1255_p0), [#allocation2], %s650_s17 }
  0x52   : > { %967 = dma.done.wait (%p1256_p4), %s234_s29, 512  }
  0x53   : > { %969 = vsyncadd (%p1256_p4), %s234_s29, 4294966784  ;;  %p1257_p8 = scmp.eq.s32.totalorder %s1055_s22, 0 }
  0x55   : > { %971 = dma.done.wait (%p1257_p8), [#allocation6], 2048   ;;  %p1258_p3 = pmov %p1257_p8 }
  0x56   : > { %v812_v0 = vld [vmem:[#allocation5 + $0x38] sm:$0xff]   ;;  %v813_v1 = vld [vmem:[#allocation5 + $0x30] sm:$0xff]   ;;  %v814_v2 = vld [vmem:[#allocation5 + $0x28] sm:$0xff]   ;;  %s271_s11 = scalar_lea.vmem [#allocation8], %s650_s17  ;;  %s678_s12 = sshll.u32 %s1055_s22, 9 }
  0x57   : > { %973 = vsyncadd (%p1258_p3), [#allocation6], 4294965248  ;;  %699 = vmatprep.subr.bf16.mxu0 %v812_v0  ;;  %v815_v3 = vld [vmem:[#allocation5 + $0x20] sm:$0xff]   ;;  %v276_v5 = vld [vmem:[%s1167_s30 + $0x8] sm:$0xff]  ;;  %s549_s28 = sshll.u32 %s271_s11, 4  ;;  %s1193_s9 = scalar_lea.hbm %s1243_s5, %s678_s12  ;;  %s1195_s28 = int_to_ptr.vmem [resolvable:$true] %s549_s28 }
  0x58   : > { %700 = vmatpush3.bf16.msra.mxu0 %v812_v0  ;;  %v275_v4 = vld [vmem:[%s1167_s30] sm:$0xff]  ;;  %v816_v7 = vld [vmem:[#allocation5 + $0x18] sm:$0xff]   ;;  %v821_v9 = vld [vmem:[#allocation7 + $0x30] sm:$0xff]   ;;  %s536_s13 = scalar_lea.sflag [#allocation4], %s1161_s16  ;;  %s924_s14 = scalar_lea.vmem %s1195_s28, 512 }
  0x59   : > { %701 = vmatprep.subr.bf16.mxu0 %v813_v1  ;;  %v279_v6 = vpack.c.bf16 %v276_v5, %v275_v4  ;;  %v820_v8 = vld [vmem:[#allocation7 + $0x38] sm:$0xff]   ;;  %v817_v10 = vld [vmem:[#allocation5 + $0x10] sm:$0xff]   ;;  %v818_v11 = vld [vmem:[#allocation5 + $0x8] sm:$0xff]   ;;  %p925_p11 = scmp.ne.s32.totalorder %s1195_s28, %s924_s14  ;;  %p1259_p10 = scmp.ne.s32.totalorder %s1253_s23, 0 }
  0x5a   : > { %719 = vmatprep.subr.bf16.mxu1 %v820_v8  ;;  %v819_v12 = vld [vmem:[#allocation5] sm:$0xff]   ;;  %v277_v13 = vld [vmem:[%s1167_s30 + $0x10] sm:$0xff]  ;;  %v278_v14 = vld [vmem:[%s1167_s30 + $0x18] sm:$0xff]  ;;  %s1001_s22 = smov [#allocation8]  }
  0x5b   : > { %715 = vmatprep.mubr.bf16.mxu0 %v279_v6  ;;  %720 = vmatpush3.bf16.msra.mxu1 %v820_v8  ;;  %v280_v15 = vpack.c.bf16 %v278_v14, %v277_v13  ;;  %v822_v16 = vld [vmem:[#allocation7 + $0x28] sm:$0xff]   ;;  %v823_v17 = vld [vmem:[#allocation7 + $0x20] sm:$0xff]   ;;  %v824_v18 = vld [vmem:[#allocation7 + $0x18] sm:$0xff]   ;;  %p926_p1 = pnand %p925_p11, %p1259_p10  ;;  %s928_s17 = sshll.u32 %s1001_s22, 4  ;;  %s929_s17 = int_to_ptr.vmem [resolvable:$false] %s928_s17 }
  0x5c   : > { %702 = vmatpush3.bf16.msra.mxu0 %v813_v1  ;;  %721 = vmatprep.subr.bf16.mxu1 %v821_v9  ;;  %v825_v19 = vld [vmem:[#allocation7 + $0x10] sm:$0xff]   ;;  %v826_v20 = vld [vmem:[#allocation7 + $0x8] sm:$0xff]   ;;  %v827_v21 = vld [vmem:[#allocation7] sm:$0xff]   ;;  %s930_s29 = scalar_lea.vmem %s929_s17, 1024  ;;  %p931_p6 = scmp.lt.s32.totalorder %s1195_s28, %s929_s17 }
  0x5d   : > { %703 = vmatprep.subr.bf16.mxu0 %v814_v2  ;;  %v654_v23 = vld [vmem:[%s1240_s2] ss:$0 sm:$0xff]  ;;  %p927_p2 = pneg %p926_p1  ;;  %p932_p12 = scmp.lt.s32.totalorder %s930_s29, %s924_s14 }
  0x5e   : > { %v663_v37 = vld [vmem:[%s1242_s4] ss:$0 sm:$0xff] }
  0x5f   : > { %722 = vmatpush3.bf16.msra.mxu1 %v821_v9  ;;  %p933_p7 = por %p932_p12, %p931_p6 }
  0x60   : > { %704 = vmatpush3.bf16.msra.mxu0 %v814_v2  ;;  %723 = vmatprep.subr.bf16.mxu1 %v822_v16 }
  0x61   : > { %705 = vmatprep.subr.bf16.mxu0 %v815_v3  ;;  %p934_p9 = pnand %p933_p7, %p927_p2 }
  0x63   : > { %724 = vmatpush3.bf16.msra.mxu1 %v822_v16 }
  0x64   : > { %706 = vmatpush3.bf16.msra.mxu0 %v815_v3  ;;  %725 = vmatprep.subr.bf16.mxu1 %v823_v17 }
  0x65   : > { %707 = vmatprep.subr.bf16.mxu0 %v816_v7 }
  0x67   : > { %726 = vmatpush3.bf16.msra.mxu1 %v823_v17 }
  0x68   : > { %708 = vmatpush3.bf16.msra.mxu0 %v816_v7  ;;  %727 = vmatprep.subr.bf16.mxu1 %v824_v18 }
  0x69   : > { %709 = vmatprep.subr.bf16.mxu0 %v817_v10 }
  0x6b   : > { %728 = vmatpush3.bf16.msra.mxu1 %v824_v18 }
  0x6c   : > { %710 = vmatpush3.bf16.msra.mxu0 %v817_v10  ;;  %729 = vmatprep.subr.bf16.mxu1 %v825_v19 }
  0x6d   : > { %711 = vmatprep.subr.bf16.mxu0 %v818_v11 }
  0x6f   : > { %730 = vmatpush3.bf16.msra.mxu1 %v825_v19 }
  0x70   : > { %712 = vmatpush3.bf16.msra.mxu0 %v818_v11  ;;  %731 = vmatprep.subr.bf16.mxu1 %v826_v20 }
  0x71   : > { %713 = vmatprep.subr.bf16.mxu0 %v819_v12 }
  0x73   : > { %732 = vmatpush3.bf16.msra.mxu1 %v826_v20 }
  0x74   : > { %714 = vmatpush3.bf16.msra.mxu0 %v819_v12  ;;  %733 = vmatprep.subr.bf16.mxu1 %v827_v21 }
  0x77   : > { %716 = vmatmul.mubr.bf16.vlgmr.msra.gmra.mxu0 %v280_v15  ;;  %734 = vmatpush3.bf16.msra.mxu1 %v827_v21 }
 0x137   : > { %v717_v22 = vpop.f32.mrf.mxu0 }
 0x138   : > { %v395_v28 = vadd.f32 %v717_v22, %v654_v23 }
 0x139   : > { %v386_v24 = vpop.f32.mrf.mxu0 }
 0x13a   : > { %v387_v25 = vadd.f32 %v654_v23, %v386_v24 }
 0x13b   : > { %v718_v26 = vpop.f32.mrf.mxu0 }
 0x13c   : > { %v398_v27 = vadd.f32 %v718_v26, %v654_v23  ;;  %828 = vtanh.f32 %v387_v25 }
 0x13d   : > { %v389_v29 = vpop.f32.mrf.mxu0 }
 0x13e   : > { %v390_v30 = vadd.f32 %v654_v23, %v389_v29  ;;  %830 = vtanh.f32 %v398_v27 }
 0x140   : > { %832 = vtanh.f32 %v390_v30 }
 0x141   : > { %834 = vtanh.f32 %v395_v28 }
 0x149   : > { %v829_v31 = vpop.eup %828 }
 0x14b   : > { %v831_v32 = vpop.eup %830 }
 0x14d   : > { %v833_v33 = vpop.eup %832 }
 0x14e   : > { %v835_v34 = vpop.eup %834  ;;  %v405_v35 = vpack.c.bf16 %v833_v33, %v829_v31 }
 0x14f   : > { %v406_v36 = vpack.c.bf16 %v831_v32, %v835_v34 }
 0x150   : > { %735 = vmatprep.mubr.bf16.mxu1 %v405_v35 }
 0x151   : > { %736 = vmatmul.mubr.bf16.vlgmr.msra.gmra.mxu1 %v406_v36 }
 0x211   : > { %v737_v38 = vpop.f32.mrf.mxu1 }
 0x212   : > { %v521_v39 = vadd.f32 %v737_v38, %v663_v37 }
 0x213   : > { %v512_v40 = vpop.f32.mrf.mxu1 }
 0x214   : > { %836 = vtanh.f32 %v521_v39  ;;  %v513_v41 = vadd.f32 %v663_v37, %v512_v40 }
 0x215   : > { %v738_v42 = vpop.f32.mrf.mxu1 }
 0x216   : > { %838 = vtanh.f32 %v513_v41  ;;  %v524_v43 = vadd.f32 %v738_v42, %v663_v37 }
 0x217   : > { %v515_v44 = vpop.f32.mrf.mxu1 }
 0x218   : > { %840 = vtanh.f32 %v524_v43  ;;  %v516_v45 = vadd.f32 %v663_v37, %v515_v44 }
 0x21a   : > { %842 = vtanh.f32 %v516_v45 }
 0x221   : > { %v837_v46 = vpop.eup %836 }
 0x222   : > { %533 = vst [vmem:[%s271_s11 + $0x10] sm:$0xff] %v837_v46 }
 0x223   : > { %v839_v47 = vpop.eup %838 }
 0x224   : > { %531 = vst [vmem:[%s271_s11] sm:$0xff] %v839_v47 }
 0x225   : > { %v841_v48 = vpop.eup %840 }
 0x226   : > { %534 = vst [vmem:[%s271_s11 + $0x18] sm:$0xff] %v841_v48 }
 0x227   : > { %v843_v49 = vpop.eup %842 }
 0x228   : > { %532 = vst [vmem:[%s271_s11 + $0x8] sm:$0xff] %v843_v49 }
 0x229   : > { %937 = shalt.err (!%p934_p9)
}
 0x22a   : > { %s938_s30 = scalar_lea.hbm %s1193_s9, 512  ;;  %s942_s8 = scalar_lea.hbm %s1243_s5, 1024 }
 0x22b   : > { %p939_p13 = scmp.ne.s32.totalorder %s1193_s9, %s938_s30  ;;  %p943_p4 = scmp.lt.s32.totalorder %s1193_s9, %s1243_s5 }
 0x22c   : > { %p944_p8 = scmp.lt.s32.totalorder %s942_s8, %s938_s30 }
 0x22d   : > { %p940_p5 = pnand %p939_p13, %p1259_p10 }
 0x22e   : > { %p945_p3 = por %p944_p8, %p943_p4 }
 0x22f   : > { %p941_p0 = pneg %p940_p5 }
 0x231   : > { %p946_p11 = pnand %p945_p3, %p941_p0 }
 0x233   : > { %949 = shalt.err (!%p946_p11)
}
 0x234   : > { %s1002_s12 = smov 128   ;;  %s1003_s6 = smov 8  }
 0x235   : > { %749 = dma.vmem_to_hbm [thread:$0]  (%p1259_p10), %s1195_s28, 512, %s1193_s9, %s536_s13, %s1002_s12, %s1002_s12, %s1003_s6  }
 0x236 PF: > { %s564_s7 = sand.u32 1, %s980_s18   ;;  %p1260_p1 = scmp.ne.s32.totalorder %s1249_s25, 0 }
 0x237   : > { %p1261_p2 = scmp.ge.s32.totalorder %s992_s21, 2  ;;  %s565_s14 = scalar_lea.sflag [#allocation4], %s564_s7 }
 0x239   : > { %p763_p6 = pnand %p1261_p2, %p1260_p1 }
 0x23b   : > { %p764_p12 = pneg %p763_p6 }
 0x23d   : > { %975 = dma.done.wait (%p764_p12), %s565_s14, 512  }
 0x23e   : > { %977 = vsyncadd (%p764_p12), %s565_s14, 4294966784  ;;  %p19_p7 = scmp.ge.s32.totalorder %s1106_s15, 4   ;;  %s1262_s18 = smov %s984_s19 }
 0x23f   : > { %s1263_s19 = smov %s988_s20  ;;  %s1264_s20 = smov %s1122_s27 }
 0x240   : > { %s1265_s21 = smov %s1106_s15  ;;  %21 = sbr.rel (!%p19_p7) target bundleno = 6 (0x6), region = 93 }
 0x245   :  { %570 = vsyncpa [#allocation3], 1 }
 0x246   :  { %572 = vsyncpa [#allocation3 + $0x1], 1 }
 0x247   :  { %573 = vsyncpa [#allocation6], 1 }
 0x248   :  { %574 = vsyncpa [#allocation4], 1 }
 0x249   :  { %576 = vsyncpa [#allocation4 + $0x1], 1 }

</bundles_post_ra>
